<compile_context>
chip_gen: v5e
topology: v5e:2x2
jax: 0.10.0
libtpu: 0.0.40
codegen_flags: <defaults>
</compile_context>

<pallas_src>
import functools

import jax
import jax.numpy as jnp
from jax.experimental import pallas as pl
from jax.experimental.pallas import tpu as pltpu


def _round_up(n, m):
    return ((n + m - 1) // m) * m


def _make_mlp_softmax_kernel(num_classes):
    """Kernel factory closing over the (static) real number of classes."""

    def kernel(x_ref, w1_ref, b1_ref, w2_ref, b2_ref, o_ref):
        # ---- Layer 1: Linear (bf16 MXU inputs, f32 accumulate) + bias + ReLU
        x16 = x_ref[...].astype(jnp.bfloat16)
        w1_16 = w1_ref[...].astype(jnp.bfloat16)         # no-op if already bf16
        h = jnp.dot(x16, w1_16, preferred_element_type=jnp.float32)
        h = jnp.maximum(h + b1_ref[...], 0.0)            # f32 VPU math

        # ---- Layer 2: Linear (bf16 MXU inputs, f32 accumulate) + bias
        w2_16 = w2_ref[...].astype(jnp.bfloat16)
        logits = jnp.dot(h.astype(jnp.bfloat16), w2_16,
                         preferred_element_type=jnp.float32)
        logits = logits + b2_ref[...]

        # ---- Mask padded class lanes so they contribute nothing to softmax.
        col = jax.lax.broadcasted_iota(jnp.int32, logits.shape, 1)
        logits = jnp.where(col < num_classes, logits, jnp.float32(-1e30))

        # ---- Numerically stable softmax over the class (lane) axis.
        m = jnp.max(logits, axis=-1, keepdims=True)
        e = jnp.exp(logits - m)
        denom = jnp.sum(e, axis=-1, keepdims=True)
        o_ref[...] = e * pl.reciprocal(denom, approx=True)   # EUP, not VPU div

    return kernel


def torch_model_multiclass_forward(x, w1, b1, w2, b2, *, block_b=512):
    """x: [B, input_size] f32; w1: [in, hidden]; w2: [hidden, classes].
    Returns softmax probabilities [B, num_classes] (f32)."""
    B, K = x.shape
    H = w1.shape[1]
    C = w2.shape[1]

    Hp = _round_up(H, 128)                 # lane-aligned hidden axis
    Cp = _round_up(C, 128)                 # lane-dense output stores
    TB = min(_round_up(B, 8), block_b)     # batch tile (single step if B small)
    Bp = _round_up(B, TB)

    # Zero padding is numerically exact: ReLU(0)=0, zero W2 rows add nothing,
    # and the padded class lanes are masked to -1e30 inside the kernel.
    xp = jnp.pad(x, ((0, Bp - B), (0, 0)))
    w1p = jnp.pad(w1, ((0, 0), (0, Hp - H))).astype(jnp.bfloat16)
    b1p = jnp.pad(jnp.reshape(b1, (1, H)), ((0, 0), (0, Hp - H)))
    w2p = jnp.pad(w2, ((0, Hp - H), (0, Cp - C))).astype(jnp.bfloat16)
    b2p = jnp.pad(jnp.reshape(b2, (1, C)), ((0, 0), (0, Cp - C)))

    grid = (Bp // TB,)

    out = pl.pallas_call(
        _make_mlp_softmax_kernel(C),
        out_shape=jax.ShapeDtypeStruct((Bp, Cp), jnp.float32),
        grid_spec=pltpu.PrefetchScalarGridSpec(
            num_scalar_prefetch=0,
            grid=grid,
            in_specs=[
                # x tile marches along the batch axis.
                pl.BlockSpec((TB, K), lambda i: (i, 0)),
                # Weights / biases: constant index_map -> VMEM-resident.
                pl.BlockSpec((K, Hp), lambda i: (0, 0)),
                pl.BlockSpec((1, Hp), lambda i: (0, 0)),
                pl.BlockSpec((Hp, Cp), lambda i: (0, 0)),
                pl.BlockSpec((1, Cp), lambda i: (0, 0)),
            ],
            out_specs=pl.BlockSpec((TB, Cp), lambda i: (i, 0)),
        ),
        compiler_params=pltpu.CompilerParams(
            # Batch axis is embarrassingly parallel -> megacore on v7x.
            dimension_semantics=("parallel",),
            # Tiles here are tiny; default scoped VMEM is plenty even on
            # v7x's 64 MiB.  (If input_size grows into the thousands with
            # TB=512+, raise vmem_limit_bytes or shrink TB.)
        ),
    )(xp, w1p, b1p, w2p, b2p)

    return out[:B, :C]


def init_params(key, input_size, hidden_size=50, num_classes=3):
    """Kaiming-normal weights (fan_in mode, as nn.init.kaiming_normal_ on
    PyTorch's [out,in] layout), zero biases — matching _init_weights."""
    k1, k2 = jax.random.split(key)
    std1 = (2.0 / input_size) ** 0.5
    std2 = (2.0 / hidden_size) ** 0.5
    # Stored as [in, out] for the kernel's x @ W convention.
    w1 = std1 * jax.random.normal(k1, (input_size, hidden_size), dtype=jnp.float32)
    b1 = jnp.zeros((1, hidden_size), dtype=jnp.float32)
    w2 = std2 * jax.random.normal(k2, (hidden_size, num_classes), dtype=jnp.float32)
    b2 = jnp.zeros((1, num_classes), dtype=jnp.float32)
    return w1, b1, w2, b2


def _reference(x, w1, b1, w2, b2):
    h = jnp.maximum(x @ w1 + b1.reshape(1, -1), 0.0)
    logits = h @ w2 + b2.reshape(1, -1)
    return jax.nn.softmax(logits, axis=-1)


if __name__ == "__main__":
    input_size = 32
    hidden_size = 50
    num_classes = 3

    key = jax.random.PRNGKey(0)
    kx, kp, kx2 = jax.random.split(key, 3)
    w1, b1, w2, b2 = init_params(kp, input_size, hidden_size, num_classes)

    # ---- Small-batch case (single grid point). ----
    batch = 8
    x = jax.random.normal(kx, (batch, input_size), dtype=jnp.float32)
    y_pred = torch_model_multiclass_forward(x, w1, b1, w2, b2)
    y_pred = jax.block_until_ready(y_pred)

    assert y_pred.shape == (batch, num_classes)
    row_sums = jnp.sum(y_pred, axis=-1)
    assert jnp.allclose(row_sums, jnp.ones_like(row_sums), atol=5e-3)
    # Kernel uses bf16 MXU inputs + approx reciprocal -> loose f32 tolerance.
    ref = _reference(x, w1, b1, w2, b2)
    assert jnp.allclose(y_pred, ref, atol=2e-2), float(jnp.max(jnp.abs(y_pred - ref)))

    # ---- Larger batch: exercises the multi-step batch grid + padding path. ----
    batch2 = 1000                       # pads to 1024, grid=(2,) with TB=512
    x2 = jax.random.normal(kx2, (batch2, input_size), dtype=jnp.float32)
    y_pred2 = torch_model_multiclass_forward(x2, w1, b1, w2, b2)
    y_pred2 = jax.block_until_ready(y_pred2)

    assert y_pred2.shape == (batch2, num_classes)
    row_sums2 = jnp.sum(y_pred2, axis=-1)
    assert jnp.allclose(row_sums2, jnp.ones_like(row_sums2), atol=5e-3)
    ref2 = _reference(x2, w1, b1, w2, b2)
    assert jnp.allclose(y_pred2, ref2, atol=2e-2), float(jnp.max(jnp.abs(y_pred2 - ref2)))

    print("KERNEL_OK")
</pallas_src>

<mosaic_0001>
module attributes {stable_mosaic.version = 11 : i64} {
  func.func @kernel(%arg0: i32, %arg1: memref<8x32xf32, #tpu.memory_space<vmem>>, %arg2: memref<32x128xbf16, #tpu.memory_space<vmem>>, %arg3: memref<1x128xf32, #tpu.memory_space<vmem>>, %arg4: memref<128x128xbf16, #tpu.memory_space<vmem>>, %arg5: memref<1x128xf32, #tpu.memory_space<vmem>>, %arg6: memref<8x128xf32, #tpu.memory_space<vmem>>) attributes {dimension_semantics = [#tpu.dimension_semantics<parallel>], iteration_bounds = array<i64: 1>, scalar_prefetch = 0 : i64, scratch_operands = 0 : i64, tpu.core_type = #tpu.core_type<tc>, window_params = [{transform_indices = @transform_0, window_bounds = array<i64: 8, 32>}, {pipeline_mode = #tpu.pipeline_mode<synchronous>, transform_indices = @transform_1, window_bounds = array<i64: 32, 128>}, {pipeline_mode = #tpu.pipeline_mode<synchronous>, transform_indices = @transform_2, window_bounds = array<i64: 1, 128>}, {pipeline_mode = #tpu.pipeline_mode<synchronous>, transform_indices = @transform_3, window_bounds = array<i64: 128, 128>}, {pipeline_mode = #tpu.pipeline_mode<synchronous>, transform_indices = @transform_4, window_bounds = array<i64: 1, 128>}, {transform_indices = @transform_5, window_bounds = array<i64: 8, 128>}]} {
    %c0 = arith.constant 0 : index
    %c0_0 = arith.constant 0 : index
    %0 = vector.load %arg1[%c0, %c0_0] : memref<8x32xf32, #tpu.memory_space<vmem>>, vector<8x32xf32>
    %1 = arith.truncf %0 : vector<8x32xf32> to vector<8x32xbf16>
    %c0_1 = arith.constant 0 : index
    %c0_2 = arith.constant 0 : index
    %2 = vector.load %arg2[%c0_1, %c0_2] : memref<32x128xbf16, #tpu.memory_space<vmem>>, vector<32x128xbf16>
    %cst = arith.constant dense<0.000000e+00> : vector<8x128xf32>
    %3 = tpu.matmul %1, %2, %cst {dimension_numbers = #tpu.dot_dimension_numbers<[1], [0], [0], [1], [0, 0, 1, 1], [], []>} : vector<8x32xbf16>, vector<32x128xbf16>, vector<8x128xf32> -> vector<8x128xf32>
    %c0_3 = arith.constant 0 : index
    %c0_4 = arith.constant 0 : index
    %4 = vector.load %arg3[%c0_3, %c0_4] : memref<1x128xf32, #tpu.memory_space<vmem>>, vector<1x128xf32>
    %5 = vector.broadcast %4 : vector<1x128xf32> to vector<8x128xf32>
    %6 = arith.addf %3, %5 : vector<8x128xf32>
    %cst_5 = arith.constant 0.000000e+00 : f32
    %7 = vector.broadcast %cst_5 : f32 to vector<8x128xf32>
    %8 = arith.maximumf %6, %7 : vector<8x128xf32>
    %c0_6 = arith.constant 0 : index
    %c0_7 = arith.constant 0 : index
    %9 = vector.load %arg4[%c0_6, %c0_7] : memref<128x128xbf16, #tpu.memory_space<vmem>>, vector<128x128xbf16>
    %10 = arith.truncf %8 : vector<8x128xf32> to vector<8x128xbf16>
    %cst_8 = arith.constant dense<0.000000e+00> : vector<8x128xf32>
    %11 = tpu.matmul %10, %9, %cst_8 {dimension_numbers = #tpu.dot_dimension_numbers<[1], [0], [0], [1], [0, 0, 1, 1], [], []>} : vector<8x128xbf16>, vector<128x128xbf16>, vector<8x128xf32> -> vector<8x128xf32>
    %c0_9 = arith.constant 0 : index
    %c0_10 = arith.constant 0 : index
    %12 = vector.load %arg5[%c0_9, %c0_10] : memref<1x128xf32, #tpu.memory_space<vmem>>, vector<1x128xf32>
    %13 = vector.broadcast %12 : vector<1x128xf32> to vector<8x128xf32>
    %14 = arith.addf %11, %13 : vector<8x128xf32>
    %15 = tpu.iota {dimensions = array<i32: 1>} : vector<8x128xi32>
    %c3_i32 = arith.constant 3 : i32
    %16 = vector.broadcast %c3_i32 : i32 to vector<8x128xi32>
    %17 = arith.cmpi slt, %15, %16 : vector<8x128xi32>
    %cst_11 = arith.constant -1.000000e+30 : f32
    %18 = vector.broadcast %cst_11 : f32 to vector<8x128xf32>
    %19 = arith.select %17, %14, %18 : vector<8x128xi1>, vector<8x128xf32>
    %cst_12 = arith.constant dense<0xFF800000> : vector<8xf32>
    %20 = vector.multi_reduction <maximumf>, %19, %cst_12 [1] : vector<8x128xf32> to vector<8xf32>
    %21 = vector.shape_cast %20 : vector<8xf32> to vector<8x1xf32>
    %22 = vector.broadcast %21 : vector<8x1xf32> to vector<8x128xf32>
    %23 = arith.subf %19, %22 : vector<8x128xf32>
    %24 = math.exp %23 : vector<8x128xf32>
    %cst_13 = arith.constant dense<0.000000e+00> : vector<8xf32>
    %25 = vector.multi_reduction <add>, %24, %cst_13 [1] : vector<8x128xf32> to vector<8xf32>
    %26 = vector.shape_cast %25 : vector<8xf32> to vector<8x1xf32>
    %27 = tpu.reciprocal %26 {approx = true} : vector<8x1xf32> -> vector<8x1xf32>
    %28 = vector.broadcast %27 : vector<8x1xf32> to vector<8x128xf32>
    %29 = arith.mulf %24, %28 : vector<8x128xf32>
    %c0_14 = arith.constant 0 : index
    %c0_15 = arith.constant 0 : index
    %30 = vector.load %arg6[%c0_14, %c0_15] : memref<8x128xf32, #tpu.memory_space<vmem>>, vector<8x128xf32>
    tpu.vector_store %arg6[%c0_14, %c0_15], %29 {strides = array<i32>} : memref<8x128xf32, #tpu.memory_space<vmem>>, vector<8x128xf32>,
    return
  }
  func.func @transform_0(%arg0: i32) -> (i32, i32) {
    %c0_i32 = arith.constant 0 : i32
    %c0_i32_0 = arith.constant 0 : i32
    return %arg0, %c0_i32 : i32, i32
  }
  func.func @transform_1(%arg0: i32) -> (i32, i32) {
    %c0_i32 = arith.constant 0 : i32
    %c0_i32_0 = arith.constant 0 : i32
    %c0_i32_1 = arith.constant 0 : i32
    return %c0_i32, %c0_i32_0 : i32, i32
  }
  func.func @transform_2(%arg0: i32) -> (i32, i32) {
    %c0_i32 = arith.constant 0 : i32
    %c0_i32_0 = arith.constant 0 : i32
    %c0_i32_1 = arith.constant 0 : i32
    return %c0_i32, %c0_i32_0 : i32, i32
  }
  func.func @transform_3(%arg0: i32) -> (i32, i32) {
    %c0_i32 = arith.constant 0 : i32
    %c0_i32_0 = arith.constant 0 : i32
    %c0_i32_1 = arith.constant 0 : i32
    return %c0_i32, %c0_i32_0 : i32, i32
  }
  func.func @transform_4(%arg0: i32) -> (i32, i32) {
    %c0_i32 = arith.constant 0 : i32
    %c0_i32_0 = arith.constant 0 : i32
    %c0_i32_1 = arith.constant 0 : i32
    return %c0_i32, %c0_i32_0 : i32, i32
  }
  func.func @transform_5(%arg0: i32) -> (i32, i32) {
    %c0_i32 = arith.constant 0 : i32
    %c0_i32_0 = arith.constant 0 : i32
    return %arg0, %c0_i32 : i32, i32
  }
}

</mosaic_0001>

<bundles_post_ra>
// kernel: tpu_custom_call.1
= control target key start
LH: loop header
LB: loop body
LE: loop exit
PB: predicated region body
PF: predicated region fallthrough
CT: control target
= control target key end

     0   :  { %10 = vsyncpa [#allocation3], 0  ;;  %s440_s0 = inlined_call_operand.hbm [shape: f32[8,32], index: 0, kind: input, shape index: {}]   ;;  %s441_s1 = inlined_call_operand.hbm [shape: bf16[32,128], index: 1, kind: input, shape index: {}]   ;;  %s442_s2 = inlined_call_operand.vmem [shape: f32[1,128], index: 2, kind: input, shape index: {}]   ;;  %s443_s3 = inlined_call_operand.hbm [shape: bf16[128,128], index: 3, kind: input, shape index: {}]   ;;  %s444_s4 = inlined_call_operand.vmem [shape: f32[1,128], index: 4, kind: input, shape index: {}]   ;;  %s445_s5 = inlined_call_operand.hbm [shape: f32[8,128], index: 5, kind: output, shape index: {}]  }
   0x1   :  { %11 = vsyncpa [#allocation6], 0  ;;  %s28_s20 = sshll.u32 %s441_s1, 4  ;;  %s29_s20 = int_to_ptr.hbm [resolvable:$true] %s28_s20 }
   0x2   :  { %12 = vsyncpa [#allocation4], 0  ;;  %s386_s21 = smov [#allocation5]   ;;  %s18_s25 = sshll.u32 %s440_s0, 4  ;;  %s19_s25 = int_to_ptr.hbm [resolvable:$true] %s18_s25 }
   0x3   :  { %s30_s22 = sshll.u32 %s386_s21, 4  ;;  %s387_s26 = smov 64   ;;  %s31_s22 = int_to_ptr.vmem [resolvable:$true] %s30_s22 }
   0x4   :  { %s388_s27 = smov 4   ;;  %s389_s28 = smov [#allocation2]  }
   0x5   :  { %36 = dma.hbm_to_vmem [thread:$0]  %s29_s20, 256, %s31_s22, [#allocation6], %s387_s26, %s387_s26, %s388_s27  }
   0x6   :  { %s20_s29 = sshll.u32 %s389_s28, 4  ;;  %s43_s7 = sshll.u32 %s443_s3, 4  ;;  %s21_s29 = int_to_ptr.vmem [resolvable:$true] %s20_s29  ;;  %s44_s7 = int_to_ptr.hbm [resolvable:$true] %s43_s7 }
   0x7   :  { %23 = dma.hbm_to_vmem [thread:$0]  %s19_s25, 128, %s21_s29, [#allocation3]  }
   0x8   :  { %s390_s1 = smov [#allocation7]  }
   0x9   :  { %s45_s8 = sshll.u32 %s390_s1, 4  ;;  %s46_s8 = int_to_ptr.vmem [resolvable:$true] %s45_s8 }
   0xa   :  { %51 = dma.hbm_to_vmem [thread:$0]  %s44_s7, 1024, %s46_s8, [#allocation6], %s387_s26, %s387_s26, %s388_s27  }
   0xb   :  { %380 = dma.done.wait [#allocation3], 128  }
   0xc   :  { %381 = vsyncadd [#allocation3], 4294967168 }
   0xd   :  { %382 = dma.done.wait [#allocation6], 1280  }
   0xe   :  { %383 = vsyncadd [#allocation6], 4294966016  ;;  %v263_v0 = vld [vmem:[#allocation5 + $0x8] sm:$0xff]  ;;  %v262_v2 = vld [vmem:[#allocation5] sm:$0xff]  ;;  %vm89_vm0 = vcmask 261120   ;;  %v189_v18 = vlaneseq }
   0xf   :  { %v271_v1 = vld [vmem:[#allocation7 + $0x38] sm:$0xff]  ;;  %99 = vmatpush.bf16.msra.mxu0 %v263_v0  ;;  %v67_v3 = vld [vmem:[#allocation2] sm:$0xff]  ;;  %v270_v4 = vld [vmem:[#allocation7 + $0x30] sm:$0xff] }
  0x10   :  { %176 = vmatpush.bf16.msra.mxu1 %v271_v1  ;;  %v68_v5 = vpack.c.bf16 %v67_v3, %v67_v3  ;;  %v269_v6 = vld [vmem:[#allocation7 + $0x28] sm:$0xff]  ;;  %v268_v7 = vld [vmem:[#allocation7 + $0x20] sm:$0xff]  ;;  %v267_v8 = vld [vmem:[#allocation7 + $0x18] sm:$0xff]  ;;  %v190_v19 = vand.u32 127, %v189_v18 }
  0x11   :  { %v266_v9 = vld [vmem:[#allocation7 + $0x10] sm:$0xff]  ;;  %v265_v10 = vld [vmem:[#allocation7 + $0x8] sm:$0xff]  ;;  %v264_v11 = vld [vmem:[#allocation7] sm:$0xff] }
  0x12   :  { %v278_v12 = vld [vmem:[%s442_s2] ss:$0 sm:$0xff]  ;;  %vm191_vm1 = vcmp.lt.s32.totalorder %v190_v19, 3  ;;  %s391_s2 = smov [#allocation8]  }
  0x13   :  { %100 = vmatpush.bf16.msra.mxu0 %v262_v2  ;;  %v279_v20 = vld [vmem:[%s444_s4] ss:$0 sm:$0xff]  ;;  %s208_s11 = sshll.u32 %s391_s2, 4  ;;  %s210_s4 = sshll.u32 %s445_s5, 4  ;;  %s209_s11 = int_to_ptr.vmem [resolvable:$true] %s208_s11  ;;  %s211_s4 = int_to_ptr.hbm [resolvable:$true] %s210_s4 }
  0x14   :  { %177 = vmatpush.bf16.msra.mxu1 %v270_v4 }
  0x16   :  { %229 = vmatmul.msk.bf16.vlgmr.msra.gmra.mxu0 %vm89_vm0, %v68_v5 }
  0x18   :  { %178 = vmatpush.bf16.msra.mxu1 %v269_v6 }
  0x1c   :  { %179 = vmatpush.bf16.msra.mxu1 %v268_v7 }
  0x20   :  { %180 = vmatpush.bf16.msra.mxu1 %v267_v8 }
  0x24   :  { %181 = vmatpush.bf16.msra.mxu1 %v266_v9 }
  0x28   :  { %182 = vmatpush.bf16.msra.mxu1 %v265_v10 }
  0x2c   :  { %183 = vmatpush.bf16.msra.mxu1 %v264_v11 }
  0x93   :  { %v102_v13 = vpop.f32.mrf.mxu0 }
  0x94   :  { %v103_v14 = vadd.f32 %v278_v12, %v102_v13 }
  0x96   :  { %v106_v15 = vmax.f32 %v103_v14, 0.0 }
  0x98   :  { %v123_v16 = vpack.c.bf16 %v106_v15, %v106_v15 }
  0x9a   :  { %184 = vmatmul.bf16.vlgmr.msra.gmra.mxu1 %v123_v16 }
  0x9b   :  { %v104_v17 = vpop.f32.mrf.mxu0 }
 0x117   :  { %v185_v21 = vpop.f32.mrf.mxu1 }
 0x118   :  { %v186_v22 = vadd.f32 %v279_v20, %v185_v21 }
 0x11a   :  { %v192_v23 = vsel %vm191_vm1, %v186_v22, -1e+30 }
 0x11b   :  { %193 = vmax.xlane.f32.xlu0 %v192_v23 }
 0x11f   :  { %v187_v24 = vpop.f32.mrf.mxu1 }
 0x18e   :  { %v194_v25 = vpop.xlane.xlu0 %193 }
 0x18f   :  { %v195_v26 = vsub.f32 %v192_v23, %v194_v25 }
 0x191   :  { %v196_v27 = vmul.f32 1.442695, %v195_v26 }
 0x193   :  { %280 = vpow2.f32 %v196_v27 }
 0x199   :  { %v281_v28 = vpop.eup %280 }
 0x19a   :  { %198 = vadd.xlane.f32.xlu0 %v281_v28 }
 0x20d   :  { %v199_v29 = vpop.xlane.xlu0 %198 }
 0x20e   :  { %282 = vrcp.f32 %v199_v29 }
 0x214   :  { %v283_v30 = vpop.eup %282 }
 0x215   :  { %v201_v31 = vmul.f32 %v283_v30, %v281_v28 }
 0x217   :  { %202 = vst [vmem:[#allocation8] sm:$0xff] %v201_v31 }
 0x218   :  { %213 = dma.vmem_to_hbm [thread:$0]  %s209_s11, 128, %s211_s4, [#allocation4]  }
 0x219   :  { %384 = dma.done.wait [#allocation4], 128  }
 0x21a   :  { %385 = vsyncadd [#allocation4], 4294967168 }
 0x21b   :  { %218 = vsyncpa [#allocation3], 1 }
 0x21c   :  { %219 = vsyncpa [#allocation6], 1 }
 0x21d   :  { %220 = vsyncpa [#allocation4], 1 }

</bundles_post_ra>
